<compile_context>
chip_gen: v6e
topology: v6e:2x2x1
jax: 0.10.0
libtpu: 0.0.40
codegen_flags: <defaults>
</compile_context>

<pallas_src>
import jax
import jax.numpy as jnp
from jax.experimental import pallas as pl
from jax.experimental.pallas import tpu as pltpu

LAYER_NORM_EPS = 1e-12
_INV_SQRT2 = 0.7071067811865476

_VMEM_BUDGET_BYTES = 40 * 1024 * 1024      # stay well under v7x's 64 MiB/TC VMEM
_VMEM_LIMIT_CAP_BYTES = 48 * 1024 * 1024   # per perf review (leave Mosaic headroom)


def _gelu_exact(x):
    # erf-based GELU, matching BERT's ACT2FN["gelu"] / torch GELU default.
    return x * 0.5 * (1.0 + jax.lax.erf(x * jnp.float32(_INV_SQRT2)))


def _round_up(x, m):
    return ((x + m - 1) // m) * m


def _vmem_bytes(tr, tv, h, compute_bytes, out_bytes):
    """Worst-case (everything double-buffered) VMEM footprint of one grid step."""
    return int(
        2 * tr * h * compute_bytes        # x row tile
        + 2 * h * h * compute_bytes       # dense weight
        + 2 * 3 * h * 4                   # dense bias + LN gamma/beta (f32)
        + 2 * tv * h * compute_bytes      # embedding tile
        + 2 * tv * 4                      # decoder bias tile
        + 2 * tr * tv * out_bytes         # logits tile
        + tr * h * compute_bytes          # h scratch (single copy)
    )


def _mlm_head_kernel(x_ref, wd_ref, bd_ref, g_ref, beta_ref, we_ref, db_ref,
                     o_ref, h_ref):
    """grid = (row_tiles, vocab_tiles); vocab axis is innermost ('arbitrary').

    j == 0 of each row tile: h = LayerNorm(gelu(x @ W_d^T + b_d)) into VMEM
    scratch (stored in the matmul/compute dtype).  Every vocab step then only
    runs the decoder matmul  scores = h @ W_emb_tile^T + dec_bias_tile.
    """
    @pl.when(pl.program_id(1) == 0)
    def _():
        # dense: contract last dims of x [TR,H] and W_d [H_out,H_in] -> (TR, H)
        h = jax.lax.dot_general(
            x_ref[...], wd_ref[...],
            dimension_numbers=(((1,), (1,)), ((), ())),
            preferred_element_type=jnp.float32)
        h = h + bd_ref[...].astype(jnp.float32)
        h = _gelu_exact(h)
        # LayerNorm over hidden dim — two-pass variance (never negative).
        mean = jnp.mean(h, axis=-1, keepdims=True)
        d = h - mean
        var = jnp.mean(d * d, axis=-1, keepdims=True)
        h = d * jax.lax.rsqrt(var + LAYER_NORM_EPS)
        h = h * g_ref[...].astype(jnp.float32) + beta_ref[...].astype(jnp.float32)
        h_ref[...] = h.astype(h_ref.dtype)      # single cast per row tile

    # decoder: h @ W_emb_tile^T + bias_tile   (per-vocab-step work, MXU-bound)
    scores = jax.lax.dot_general(
        h_ref[...], we_ref[...],
        dimension_numbers=(((1,), (1,)), ((), ())),
        preferred_element_type=jnp.float32)                     # (TR, TV)
    o_ref[...] = (scores + db_ref[...].astype(jnp.float32)).astype(o_ref.dtype)


def bert_pretraining_heads(sequence_output, pooled_output, params, *,
                           row_tile=512, vocab_tile=2048,
                           compute_dtype=jnp.bfloat16,
                           logits_dtype=jnp.float32,
                           emb_buffer_count=None):
    """Returns (prediction_scores [B,S,V] in logits_dtype, seq_relationship_score [B,2]).

    compute_dtype:   dtype fed to the MXU (bf16 recommended on all generations;
                     accumulation is always f32, GELU/LN math is f32).
    logits_dtype:    dtype of the (N, V) logits write; bf16 halves that HBM stream.
    emb_buffer_count: optional pipeline depth for the embedding tile (e.g. 3 on v6e).
    """
    B, S, H = sequence_output.shape
    V = params["emb_w"].shape[0]
    N = B * S

    compute_dtype = jnp.dtype(compute_dtype)
    logits_dtype = jnp.dtype(logits_dtype)
    cbytes = compute_dtype.itemsize
    obytes = logits_dtype.itemsize

    # ---- tile selection (shrink vocab_tile first; row_tile sets HBM intensity) ---
    vocab_tile = max(128, _round_up(vocab_tile, 128))
    tr = _round_up(max(8, min(row_tile, _round_up(N, 8))), 8)
    tv = V if V <= vocab_tile else vocab_tile
    while _vmem_bytes(tr, tv, H, cbytes, obytes) > _VMEM_BUDGET_BYTES:
        if tv != V and tv > 512:
            tv //= 2
        elif tr > 128:
            tr //= 2
        else:
            break

    n_pad = _round_up(N, tr)
    v_pad = V if tv == V else _round_up(V, tv)
    grid = (n_pad // tr, v_pad // tv)

    # ---- cast to the MXU dtype, pad only if the tiles don't divide the shapes ----
    # At real BERT sizes pick row_tile | B*S (no row padding) and either choose a
    # vocab_tile with small remainder or keep the padded logits and mask in the
    # loss instead of paying the post-hoc (N, V) slice copy.
    x = sequence_output.reshape(N, H).astype(compute_dtype)
    wd = params["dense_w"].astype(compute_dtype)
    emb_w = params["emb_w"].astype(compute_dtype)
    dec_b = params["dec_b"]
    if n_pad != N:
        x = jnp.pad(x, ((0, n_pad - N), (0, 0)))
    if v_pad != V:
        emb_w = jnp.pad(emb_w, ((0, v_pad - V), (0, 0)))
        dec_b = jnp.pad(dec_b, ((0, 0), (0, v_pad - V)))

    # ---- cost estimate: embedding matrix is re-streamed once per row tile --------
    num_row_tiles = n_pad // tr
    cost = pl.CostEstimate(
        flops=2 * n_pad * H * (H + v_pad),
        transcendentals=n_pad * H,
        bytes_accessed=int(
            n_pad * H * cbytes                              # activations
            + H * H * cbytes + 3 * H * 4                    # dense + LN params
            + num_row_tiles * (v_pad * H * cbytes + v_pad * 4)  # emb + dec bias stream
            + n_pad * v_pad * obytes),                      # logits write
    )

    vmem_limit = int(min(_VMEM_LIMIT_CAP_BYTES,
                         max(32 * 1024 * 1024,
                             _vmem_bytes(tr, tv, H, cbytes, obytes)
                             + 8 * 1024 * 1024)))

    def _call(use_pipeline_mode):
        # Constant-index params gain nothing from double-buffering; Buffered(1)
        # reclaims their second VMEM copy (most valuable on v7x's 64 MiB).
        const_kw = {"pipeline_mode": pl.Buffered(1)} if use_pipeline_mode else {}
        emb_kw = ({"pipeline_mode": pl.Buffered(emb_buffer_count)}
                  if (use_pipeline_mode and emb_buffer_count) else {})
        grid_spec = pltpu.PrefetchScalarGridSpec(
            num_scalar_prefetch=0,
            grid=grid,
            in_specs=[
                pl.BlockSpec((tr, H), lambda i, j: (i, 0)),              # token rows
                pl.BlockSpec((H, H), lambda i, j: (0, 0), **const_kw),   # dense weight
                pl.BlockSpec((1, H), lambda i, j: (0, 0), **const_kw),   # dense bias
                pl.BlockSpec((1, H), lambda i, j: (0, 0), **const_kw),   # LN gamma
                pl.BlockSpec((1, H), lambda i, j: (0, 0), **const_kw),   # LN beta
                pl.BlockSpec((tv, H), lambda i, j: (j, 0), **emb_kw),    # emb tile (V,H)
                pl.BlockSpec((1, tv), lambda i, j: (0, j)),              # decoder bias
            ],
            out_specs=pl.BlockSpec((tr, tv), lambda i, j: (i, j)),
            scratch_shapes=[pltpu.VMEM((tr, H), compute_dtype)],
        )
        return pl.pallas_call(
            _mlm_head_kernel,
            out_shape=jax.ShapeDtypeStruct((n_pad, v_pad), logits_dtype),
            grid_spec=grid_spec,
            compiler_params=pltpu.CompilerParams(
                dimension_semantics=("parallel", "arbitrary"),
                vmem_limit_bytes=vmem_limit),
            cost_estimate=cost,
        )(x, wd, params["dense_b"], params["ln_g"], params["ln_b"], emb_w, dec_b)

    try:
        pred_flat = _call(use_pipeline_mode=True)
    except Exception:
        # pipeline_mode=pl.Buffered(1) not supported on this jax/Mosaic version;
        # default double-buffering of the constant-index params only costs a few
        # MiB of VMEM, so fall back rather than fail.
        pred_flat = _call(use_pipeline_mode=False)

    if n_pad != N or v_pad != V:
        pred_flat = pred_flat[:N, :V]
    prediction_scores = pred_flat.reshape(B, S, V)

    # ---- NSP head: a (B, 2) GEMM.  A pallas_call here costs more in launch
    # overhead + lane-width-2 masked stores than the matmul itself, so it is left
    # to XLA to fuse with neighbours.
    seq_relationship_score = (
        jnp.dot(pooled_output, params["sr_w"].T, preferred_element_type=jnp.float32)
        + params["sr_b"]
    ).astype(pooled_output.dtype)

    return prediction_scores, seq_relationship_score


def init_params(key, hidden_size, vocab_size):
    """Deterministic synthetic parameter init (shapes follow the PyTorch module)."""
    ks = jax.random.split(key, 6)
    scale = 0.02
    return {
        # BertPredictionHeadTransform.dense: Linear(H, H), PyTorch [out, in] layout
        "dense_w": scale * jax.random.normal(ks[0], (hidden_size, hidden_size), jnp.float32),
        "dense_b": scale * jax.random.normal(ks[1], (1, hidden_size), jnp.float32),
        # BertLayerNorm(H)
        "ln_g": jnp.ones((1, hidden_size), jnp.float32),
        "ln_b": jnp.zeros((1, hidden_size), jnp.float32),
        # tied bert_model_embedding_weights: (V, H); decoder bias zeros(V)
        "emb_w": scale * jax.random.normal(ks[2], (vocab_size, hidden_size), jnp.float32),
        "dec_b": jnp.zeros((1, vocab_size), jnp.float32),
        # seq_relationship: Linear(H, 2)
        "sr_w": scale * jax.random.normal(ks[3], (2, hidden_size), jnp.float32),
        "sr_b": scale * jax.random.normal(ks[4], (1, 2), jnp.float32),
    }


def _reference(sequence_output, pooled_output, params):
    """Pure-JAX f32 reference matching the PyTorch forward."""
    h = jnp.einsum("bsh,oh->bso", sequence_output, params["dense_w"]) + params["dense_b"][0]
    h = _gelu_exact(h)
    mean = jnp.mean(h, axis=-1, keepdims=True)
    var = jnp.mean((h - mean) ** 2, axis=-1, keepdims=True)
    h = (h - mean) * jax.lax.rsqrt(var + LAYER_NORM_EPS)
    h = h * params["ln_g"][0] + params["ln_b"][0]
    pred = jnp.einsum("bsh,vh->bsv", h, params["emb_w"]) + params["dec_b"][0]
    sr = pooled_output @ params["sr_w"].T + params["sr_b"]
    return pred, sr


if __name__ == "__main__":
    B, S, H, V = 2, 8, 32, 64
    key = jax.random.PRNGKey(0)
    k_seq, k_pool, k_params = jax.random.split(key, 3)

    sequence_output = jax.random.normal(k_seq, (B, S, H), jnp.float32)
    pooled_output = jax.random.normal(k_pool, (B, H), jnp.float32)
    params = init_params(k_params, H, V)

    pred_scores, seq_rel = bert_pretraining_heads(sequence_output, pooled_output, params)
    jax.block_until_ready((pred_scores, seq_rel))

    assert pred_scores.shape == (B, S, V)
    assert seq_rel.shape == (B, 2)

    # sanity-check against the f32 pure-JAX reference (kernel matmuls run in bf16)
    ref_pred, ref_sr = _reference(sequence_output, pooled_output, params)
    assert jnp.allclose(pred_scores.astype(jnp.float32), ref_pred, rtol=2e-2, atol=2e-2)
    assert jnp.allclose(seq_rel, ref_sr, rtol=1e-2, atol=1e-2)

    print("KERNEL_OK")
</pallas_src>

<mosaic_0001>
module attributes {stable_mosaic.version = 11 : i64} {
  func.func @_mlm_head_kernel(%arg0: i32, %arg1: i32, %arg2: memref<16x32xbf16, #tpu.memory_space<vmem>>, %arg3: memref<32x32xbf16, #tpu.memory_space<vmem>>, %arg4: memref<1x32xf32, #tpu.memory_space<vmem>>, %arg5: memref<1x32xf32, #tpu.memory_space<vmem>>, %arg6: memref<1x32xf32, #tpu.memory_space<vmem>>, %arg7: memref<64x32xbf16, #tpu.memory_space<vmem>>, %arg8: memref<1x64xf32, #tpu.memory_space<vmem>>, %arg9: memref<16x64xf32, #tpu.memory_space<vmem>>, %arg10: memref<16x32xbf16, #tpu.memory_space<vmem>>) attributes {dimension_semantics = [#tpu.dimension_semantics<parallel>, #tpu.dimension_semantics<arbitrary>], iteration_bounds = array<i64: 1, 1>, scalar_prefetch = 0 : i64, scratch_operands = 1 : i64, tpu.core_type = #tpu.core_type<tc>, window_params = [{transform_indices = @transform_0, window_bounds = array<i64: 16, 32>}, {pipeline_mode = #tpu.pipeline_mode<synchronous>, transform_indices = @transform_1, window_bounds = array<i64: 32, 32>}, {pipeline_mode = #tpu.pipeline_mode<synchronous>, transform_indices = @transform_2, window_bounds = array<i64: 1, 32>}, {pipeline_mode = #tpu.pipeline_mode<synchronous>, transform_indices = @transform_3, window_bounds = array<i64: 1, 32>}, {pipeline_mode = #tpu.pipeline_mode<synchronous>, transform_indices = @transform_4, window_bounds = array<i64: 1, 32>}, {transform_indices = @transform_5, window_bounds = array<i64: 64, 32>}, {transform_indices = @transform_6, window_bounds = array<i64: 1, 64>}, {transform_indices = @transform_7, window_bounds = array<i64: 16, 64>}]} {
    %c0_i32 = arith.constant 0 : i32
    %0 = arith.cmpi eq, %arg1, %c0_i32 : i32
    %1 = arith.extui %0 : i1 to i32
    %c0_i32_0 = arith.constant 0 : i32
    %2 = arith.cmpi ne, %1, %c0_i32_0 : i32
    scf.if %2 {
      %c0_8 = arith.constant 0 : index
      %c0_9 = arith.constant 0 : index
      %10 = vector.load %arg2[%c0_8, %c0_9] : memref<16x32xbf16, #tpu.memory_space<vmem>>, vector<16x32xbf16>
      %c0_10 = arith.constant 0 : index
      %c0_11 = arith.constant 0 : index
      %11 = vector.load %arg3[%c0_10, %c0_11] : memref<32x32xbf16, #tpu.memory_space<vmem>>, vector<32x32xbf16>
      %cst_12 = arith.constant dense<0.000000e+00> : vector<16x32xf32>
      %12 = tpu.matmul %10, %11, %cst_12 {dimension_numbers = #tpu.dot_dimension_numbers<[1], [1], [0], [0], [0, 0, 1, 0], [], []>} : vector<16x32xbf16>, vector<32x32xbf16>, vector<16x32xf32> -> vector<16x32xf32>
      %c0_13 = arith.constant 0 : index
      %c0_14 = arith.constant 0 : index
      %13 = vector.load %arg4[%c0_13, %c0_14] : memref<1x32xf32, #tpu.memory_space<vmem>>, vector<1x32xf32>
      %14 = vector.broadcast %13 : vector<1x32xf32> to vector<16x32xf32>
      %15 = arith.addf %12, %14 : vector<16x32xf32>
      %cst_15 = arith.constant 5.000000e-01 : f32
      %16 = vector.broadcast %cst_15 : f32 to vector<16x32xf32>
      %17 = arith.mulf %15, %16 : vector<16x32xf32>
      %cst_16 = arith.constant 0.707106769 : f32
      %18 = vector.broadcast %cst_16 : f32 to vector<16x32xf32>
      %19 = arith.mulf %15, %18 : vector<16x32xf32>
      %20 = math.erf %19 : vector<16x32xf32>
      %cst_17 = arith.constant 1.000000e+00 : f32
      %21 = vector.broadcast %cst_17 : f32 to vector<16x32xf32>
      %22 = arith.addf %21, %20 : vector<16x32xf32>
      %23 = arith.mulf %17, %22 : vector<16x32xf32>
      %cst_18 = arith.constant dense<0.000000e+00> : vector<16xf32>
      %24 = vector.multi_reduction <add>, %23, %cst_18 [1] : vector<16x32xf32> to vector<16xf32>
      %25 = vector.shape_cast %24 : vector<16xf32> to vector<16x1xf32>
      %cst_19 = arith.constant 3.200000e+01 : f32
      %26 = vector.broadcast %cst_19 : f32 to vector<16x1xf32>
      %27 = arith.divf %25, %26 : vector<16x1xf32>
      %28 = vector.broadcast %27 : vector<16x1xf32> to vector<16x32xf32>
      %29 = arith.subf %23, %28 : vector<16x32xf32>
      %30 = arith.mulf %29, %29 : vector<16x32xf32>
      %cst_20 = arith.constant dense<0.000000e+00> : vector<16xf32>
      %31 = vector.multi_reduction <add>, %30, %cst_20 [1] : vector<16x32xf32> to vector<16xf32>
      %32 = vector.shape_cast %31 : vector<16xf32> to vector<16x1xf32>
      %cst_21 = arith.constant 3.200000e+01 : f32
      %33 = vector.broadcast %cst_21 : f32 to vector<16x1xf32>
      %34 = arith.divf %32, %33 : vector<16x1xf32>
      %cst_22 = arith.constant 9.99999996E-13 : f32
      %35 = vector.broadcast %cst_22 : f32 to vector<16x1xf32>
      %36 = arith.addf %34, %35 : vector<16x1xf32>
      %37 = math.rsqrt %36 : vector<16x1xf32>
      %38 = vector.broadcast %37 : vector<16x1xf32> to vector<16x32xf32>
      %39 = arith.mulf %29, %38 : vector<16x32xf32>
      %c0_23 = arith.constant 0 : index
      %c0_24 = arith.constant 0 : index
      %40 = vector.load %arg5[%c0_23, %c0_24] : memref<1x32xf32, #tpu.memory_space<vmem>>, vector<1x32xf32>
      %41 = vector.broadcast %40 : vector<1x32xf32> to vector<16x32xf32>
      %42 = arith.mulf %39, %41 : vector<16x32xf32>
      %c0_25 = arith.constant 0 : index
      %c0_26 = arith.constant 0 : index
      %43 = vector.load %arg6[%c0_25, %c0_26] : memref<1x32xf32, #tpu.memory_space<vmem>>, vector<1x32xf32>
      %44 = vector.broadcast %43 : vector<1x32xf32> to vector<16x32xf32>
      %45 = arith.addf %42, %44 : vector<16x32xf32>
      %46 = arith.truncf %45 : vector<16x32xf32> to vector<16x32xbf16>
      %c0_27 = arith.constant 0 : index
      %c0_28 = arith.constant 0 : index
      %47 = vector.load %arg10[%c0_27, %c0_28] : memref<16x32xbf16, #tpu.memory_space<vmem>>, vector<16x32xbf16>
      tpu.vector_store %arg10[%c0_27, %c0_28], %46 {strides = array<i32>} : memref<16x32xbf16, #tpu.memory_space<vmem>>, vector<16x32xbf16>,
    } else {
    }
    %c0 = arith.constant 0 : index
    %c0_1 = arith.constant 0 : index
    %3 = vector.load %arg10[%c0, %c0_1] : memref<16x32xbf16, #tpu.memory_space<vmem>>, vector<16x32xbf16>
    %c0_2 = arith.constant 0 : index
    %c0_3 = arith.constant 0 : index
    %4 = vector.load %arg7[%c0_2, %c0_3] : memref<64x32xbf16, #tpu.memory_space<vmem>>, vector<64x32xbf16>
    %cst = arith.constant dense<0.000000e+00> : vector<16x64xf32>
    %5 = tpu.matmul %3, %4, %cst {dimension_numbers = #tpu.dot_dimension_numbers<[1], [1], [0], [0], [0, 0, 1, 0], [], []>} : vector<16x32xbf16>, vector<64x32xbf16>, vector<16x64xf32> -> vector<16x64xf32>
    %c0_4 = arith.constant 0 : index
    %c0_5 = arith.constant 0 : index
    %6 = vector.load %arg8[%c0_4, %c0_5] : memref<1x64xf32, #tpu.memory_space<vmem>>, vector<1x64xf32>
    %7 = vector.broadcast %6 : vector<1x64xf32> to vector<16x64xf32>
    %8 = arith.addf %5, %7 : vector<16x64xf32>
    %c0_6 = arith.constant 0 : index
    %c0_7 = arith.constant 0 : index
    %9 = vector.load %arg9[%c0_6, %c0_7] : memref<16x64xf32, #tpu.memory_space<vmem>>, vector<16x64xf32>
    tpu.vector_store %arg9[%c0_6, %c0_7], %8 {strides = array<i32>} : memref<16x64xf32, #tpu.memory_space<vmem>>, vector<16x64xf32>,
    return
  }
  func.func @transform_0(%arg0: i32, %arg1: i32) -> (i32, i32) {
    %c0_i32 = arith.constant 0 : i32
    %c0_i32_0 = arith.constant 0 : i32
    return %arg0, %c0_i32 : i32, i32
  }
  func.func @transform_1(%arg0: i32, %arg1: i32) -> (i32, i32) {
    %c0_i32 = arith.constant 0 : i32
    %c0_i32_0 = arith.constant 0 : i32
    %c0_i32_1 = arith.constant 0 : i32
    return %c0_i32, %c0_i32_0 : i32, i32
  }
  func.func @transform_2(%arg0: i32, %arg1: i32) -> (i32, i32) {
    %c0_i32 = arith.constant 0 : i32
    %c0_i32_0 = arith.constant 0 : i32
    %c0_i32_1 = arith.constant 0 : i32
    return %c0_i32, %c0_i32_0 : i32, i32
  }
  func.func @transform_3(%arg0: i32, %arg1: i32) -> (i32, i32) {
    %c0_i32 = arith.constant 0 : i32
    %c0_i32_0 = arith.constant 0 : i32
    %c0_i32_1 = arith.constant 0 : i32
    return %c0_i32, %c0_i32_0 : i32, i32
  }
  func.func @transform_4(%arg0: i32, %arg1: i32) -> (i32, i32) {
    %c0_i32 = arith.constant 0 : i32
    %c0_i32_0 = arith.constant 0 : i32
    %c0_i32_1 = arith.constant 0 : i32
    return %c0_i32, %c0_i32_0 : i32, i32
  }
  func.func @transform_5(%arg0: i32, %arg1: i32) -> (i32, i32) {
    %c0_i32 = arith.constant 0 : i32
    %c0_i32_0 = arith.constant 0 : i32
    return %arg1, %c0_i32 : i32, i32
  }
  func.func @transform_6(%arg0: i32, %arg1: i32) -> (i32, i32) {
    %c0_i32 = arith.constant 0 : i32
    %c0_i32_0 = arith.constant 0 : i32
    return %c0_i32, %arg1 : i32, i32
  }
  func.func @transform_7(%arg0: i32, %arg1: i32) -> (i32, i32) {
    %c0_i32 = arith.constant 0 : i32
    return %arg0, %arg1 : i32, i32
  }
}

module attributes {stable_mosaic.version = 11 : i64} {
  func.func @_mlm_head_kernel(%arg0: i32, %arg1: i32, %arg2: memref<16x32xbf16, #tpu.memory_space<vmem>>, %arg3: memref<32x32xbf16, #tpu.memory_space<vmem>>, %arg4: memref<1x32xf32, #tpu.memory_space<vmem>>, %arg5: memref<1x32xf32, #tpu.memory_space<vmem>>, %arg6: memref<1x32xf32, #tpu.memory_space<vmem>>, %arg7: memref<64x32xbf16, #tpu.memory_space<vmem>>, %arg8: memref<1x64xf32, #tpu.memory_space<vmem>>, %arg9: memref<16x64xf32, #tpu.memory_space<vmem>>, %arg10: memref<16x32xbf16, #tpu.memory_space<vmem>>) attributes {dimension_semantics = [#tpu.dimension_semantics<parallel>, #tpu.dimension_semantics<arbitrary>], iteration_bounds = array<i64: 1, 1>, scalar_prefetch = 0 : i64, scratch_operands = 1 : i64, tpu.core_type = #tpu.core_type<tc>, window_params = [{transform_indices = @transform_0, window_bounds = array<i64: 16, 32>}, {pipeline_mode = #tpu.pipeline_mode<synchronous>, transform_indices = @transform_1, window_bounds = array<i64: 32, 32>}, {pipeline_mode = #tpu.pipeline_mode<synchronous>, transform_indices = @transform_2, window_bounds = array<i64: 1, 32>}, {pipeline_mode = #tpu.pipeline_mode<synchronous>, transform_indices = @transform_3, window_bounds = array<i64: 1, 32>}, {pipeline_mode = #tpu.pipeline_mode<synchronous>, transform_indices = @transform_4, window_bounds = array<i64: 1, 32>}, {transform_indices = @transform_5, window_bounds = array<i64: 64, 32>}, {transform_indices = @transform_6, window_bounds = array<i64: 1, 64>}, {transform_indices = @transform_7, window_bounds = array<i64: 16, 64>}]} {
    %c0_i32 = arith.constant 0 : i32
    %0 = arith.cmpi eq, %arg1, %c0_i32 : i32
    %1 = arith.extui %0 : i1 to i32
    %c0_i32_0 = arith.constant 0 : i32
    %2 = arith.cmpi ne, %1, %c0_i32_0 : i32
    scf.if %2 {
      %c0_8 = arith.constant 0 : index
      %c0_9 = arith.constant 0 : index
      %10 = vector.load %arg2[%c0_8, %c0_9] : memref<16x32xbf16, #tpu.memory_space<vmem>>, vector<16x32xbf16>
      %c0_10 = arith.constant 0 : index
      %c0_11 = arith.constant 0 : index
      %11 = vector.load %arg3[%c0_10, %c0_11] : memref<32x32xbf16, #tpu.memory_space<vmem>>, vector<32x32xbf16>
      %cst_12 = arith.constant dense<0.000000e+00> : vector<16x32xf32>
      %12 = tpu.matmul %10, %11, %cst_12 {dimension_numbers = #tpu.dot_dimension_numbers<[1], [1], [0], [0], [0, 0, 1, 0], [], []>} : vector<16x32xbf16>, vector<32x32xbf16>, vector<16x32xf32> -> vector<16x32xf32>
      %c0_13 = arith.constant 0 : index
      %c0_14 = arith.constant 0 : index
      %13 = vector.load %arg4[%c0_13, %c0_14] : memref<1x32xf32, #tpu.memory_space<vmem>>, vector<1x32xf32>
      %14 = vector.broadcast %13 : vector<1x32xf32> to vector<16x32xf32>
      %15 = arith.addf %12, %14 : vector<16x32xf32>
      %cst_15 = arith.constant 5.000000e-01 : f32
      %16 = vector.broadcast %cst_15 : f32 to vector<16x32xf32>
      %17 = arith.mulf %15, %16 : vector<16x32xf32>
      %cst_16 = arith.constant 0.707106769 : f32
      %18 = vector.broadcast %cst_16 : f32 to vector<16x32xf32>
      %19 = arith.mulf %15, %18 : vector<16x32xf32>
      %20 = math.erf %19 : vector<16x32xf32>
      %cst_17 = arith.constant 1.000000e+00 : f32
      %21 = vector.broadcast %cst_17 : f32 to vector<16x32xf32>
      %22 = arith.addf %21, %20 : vector<16x32xf32>
      %23 = arith.mulf %17, %22 : vector<16x32xf32>
      %cst_18 = arith.constant dense<0.000000e+00> : vector<16xf32>
      %24 = vector.multi_reduction <add>, %23, %cst_18 [1] : vector<16x32xf32> to vector<16xf32>
      %25 = vector.shape_cast %24 : vector<16xf32> to vector<16x1xf32>
      %cst_19 = arith.constant 3.200000e+01 : f32
      %26 = vector.broadcast %cst_19 : f32 to vector<16x1xf32>
      %27 = arith.divf %25, %26 : vector<16x1xf32>
      %28 = vector.broadcast %27 : vector<16x1xf32> to vector<16x32xf32>
      %29 = arith.subf %23, %28 : vector<16x32xf32>
      %30 = arith.mulf %29, %29 : vector<16x32xf32>
      %cst_20 = arith.constant dense<0.000000e+00> : vector<16xf32>
      %31 = vector.multi_reduction <add>, %30, %cst_20 [1] : vector<16x32xf32> to vector<16xf32>
      %32 = vector.shape_cast %31 : vector<16xf32> to vector<16x1xf32>
      %cst_21 = arith.constant 3.200000e+01 : f32
      %33 = vector.broadcast %cst_21 : f32 to vector<16x1xf32>
      %34 = arith.divf %32, %33 : vector<16x1xf32>
      %cst_22 = arith.constant 9.99999996E-13 : f32
      %35 = vector.broadcast %cst_22 : f32 to vector<16x1xf32>
      %36 = arith.addf %34, %35 : vector<16x1xf32>
      %37 = math.rsqrt %36 : vector<16x1xf32>
      %38 = vector.broadcast %37 : vector<16x1xf32> to vector<16x32xf32>
      %39 = arith.mulf %29, %38 : vector<16x32xf32>
      %c0_23 = arith.constant 0 : index
      %c0_24 = arith.constant 0 : index
      %40 = vector.load %arg5[%c0_23, %c0_24] : memref<1x32xf32, #tpu.memory_space<vmem>>, vector<1x32xf32>
      %41 = vector.broadcast %40 : vector<1x32xf32> to vector<16x32xf32>
      %42 = arith.mulf %39, %41 : vector<16x32xf32>
      %c0_25 = arith.constant 0 : index
      %c0_26 = arith.constant 0 : index
      %43 = vector.load %arg6[%c0_25, %c0_26] : memref<1x32xf32, #tpu.memory_space<vmem>>, vector<1x32xf32>
      %44 = vector.broadcast %43 : vector<1x32xf32> to vector<16x32xf32>
      %45 = arith.addf %42, %44 : vector<16x32xf32>
      %46 = arith.truncf %45 : vector<16x32xf32> to vector<16x32xbf16>
      %c0_27 = arith.constant 0 : index
      %c0_28 = arith.constant 0 : index
      %47 = vector.load %arg10[%c0_27, %c0_28] : memref<16x32xbf16, #tpu.memory_space<vmem>>, vector<16x32xbf16>
      tpu.vector_store %arg10[%c0_27, %c0_28], %46 {strides = array<i32>} : memref<16x32xbf16, #tpu.memory_space<vmem>>, vector<16x32xbf16>,
    } else {
    }
    %c0 = arith.constant 0 : index
    %c0_1 = arith.constant 0 : index
    %3 = vector.load %arg10[%c0, %c0_1] : memref<16x32xbf16, #tpu.memory_space<vmem>>, vector<16x32xbf16>
    %c0_2 = arith.constant 0 : index
    %c0_3 = arith.constant 0 : index
    %4 = vector.load %arg7[%c0_2, %c0_3] : memref<64x32xbf16, #tpu.memory_space<vmem>>, vector<64x32xbf16>
    %cst = arith.constant dense<0.000000e+00> : vector<16x64xf32>
    %5 = tpu.matmul %3, %4, %cst {dimension_numbers = #tpu.dot_dimension_numbers<[1], [1], [0], [0], [0, 0, 1, 0], [], []>} : vector<16x32xbf16>, vector<64x32xbf16>, vector<16x64xf32> -> vector<16x64xf32>
    %c0_4 = arith.constant 0 : index
    %c0_5 = arith.constant 0 : index
    %6 = vector.load %arg8[%c0_4, %c0_5] : memref<1x64xf32, #tpu.memory_space<vmem>>, vector<1x64xf32>
    %7 = vector.broadcast %6 : vector<1x64xf32> to vector<16x64xf32>
    %8 = arith.addf %5, %7 : vector<16x64xf32>
    %c0_6 = arith.constant 0 : index
    %c0_7 = arith.constant 0 : index
    %9 = vector.load %arg9[%c0_6, %c0_7] : memref<16x64xf32, #tpu.memory_space<vmem>>, vector<16x64xf32>
    tpu.vector_store %arg9[%c0_6, %c0_7], %8 {strides = array<i32>} : memref<16x64xf32, #tpu.memory_space<vmem>>, vector<16x64xf32>,
    return
  }
  func.func @transform_0(%arg0: i32, %arg1: i32) -> (i32, i32) {
    %c0_i32 = arith.constant 0 : i32
    %c0_i32_0 = arith.constant 0 : i32
    return %arg0, %c0_i32 : i32, i32
  }
  func.func @transform_1(%arg0: i32, %arg1: i32) -> (i32, i32) {
    %c0_i32 = arith.constant 0 : i32
    %c0_i32_0 = arith.constant 0 : i32
    %c0_i32_1 = arith.constant 0 : i32
    return %c0_i32, %c0_i32_0 : i32, i32
  }
  func.func @transform_2(%arg0: i32, %arg1: i32) -> (i32, i32) {
    %c0_i32 = arith.constant 0 : i32
    %c0_i32_0 = arith.constant 0 : i32
    %c0_i32_1 = arith.constant 0 : i32
    return %c0_i32, %c0_i32_0 : i32, i32
  }
  func.func @transform_3(%arg0: i32, %arg1: i32) -> (i32, i32) {
    %c0_i32 = arith.constant 0 : i32
    %c0_i32_0 = arith.constant 0 : i32
    %c0_i32_1 = arith.constant 0 : i32
    return %c0_i32, %c0_i32_0 : i32, i32
  }
  func.func @transform_4(%arg0: i32, %arg1: i32) -> (i32, i32) {
    %c0_i32 = arith.constant 0 : i32
    %c0_i32_0 = arith.constant 0 : i32
    %c0_i32_1 = arith.constant 0 : i32
    return %c0_i32, %c0_i32_0 : i32, i32
  }
  func.func @transform_5(%arg0: i32, %arg1: i32) -> (i32, i32) {
    %c0_i32 = arith.constant 0 : i32
    %c0_i32_0 = arith.constant 0 : i32
    return %arg1, %c0_i32 : i32, i32
  }
  func.func @transform_6(%arg0: i32, %arg1: i32) -> (i32, i32) {
    %c0_i32 = arith.constant 0 : i32
    %c0_i32_0 = arith.constant 0 : i32
    return %c0_i32, %arg1 : i32, i32
  }
  func.func @transform_7(%arg0: i32, %arg1: i32) -> (i32, i32) {
    %c0_i32 = arith.constant 0 : i32
    return %arg0, %arg1 : i32, i32
  }
}

</mosaic_0001>

<bundles_post_ra>
// kernel: tpu_custom_call.1
= control target key start
LH: loop header
LB: loop body
LE: loop exit
PB: predicated region body
PF: predicated region fallthrough
CT: control target
= control target key end

     0   :  { %v384_v1 = vmov 0.0   ;;  %vm60_vm0 = vcmask 261120   ;;  %vm385_vm1 = vmmov 0   ;;  %s477_s0 = inlined_call_operand.vmem [shape: bf16[16,32], index: 0, kind: input, shape index: {}]   ;;  %s478_s1 = inlined_call_operand.vmem [shape: bf16[32,32], index: 1, kind: input, shape index: {}]   ;;  %s479_s2 = inlined_call_operand.vmem [shape: f32[1,32], index: 2, kind: input, shape index: {}]   ;;  %s480_s3 = inlined_call_operand.vmem [shape: f32[1,32], index: 3, kind: input, shape index: {}]   ;;  %s481_s4 = inlined_call_operand.vmem [shape: f32[1,32], index: 4, kind: input, shape index: {}]   ;;  %s482_s5 = inlined_call_operand.vmem [shape: bf16[64,32], index: 5, kind: input, shape index: {}]   ;;  %s483_s6 = inlined_call_operand.vmem [shape: f32[1,64], index: 6, kind: input, shape index: {}]   ;;  %s484_s7 = inlined_call_operand.hbm [shape: f32[16,64], index: 7, kind: output, shape index: {}]  }
   0x1   :  { %v346_v0 = vld [vmem:[%s478_s1 + $0x8] sm:$0xff]   ;;  %321 = vmatprep.subr.bf16.mxu0 %v384_v1  ;;  %329 = vmatprep.subr.bf16.mxu1 %v384_v1  ;;  %v347_v3 = vld [vmem:[%s478_s1] sm:$0xff]  }
   0x2   :  { %v68_v2 = vsel %vm60_vm0, %v346_v0, 0  ;;  %325 = vmatprep.mubr.msk.bf16.mxu0 %vm385_vm1, %v384_v1  ;;  %337 = vmatprep.mubr.msk.bf16.mxu1 %vm385_vm1, %v384_v1 }
   0x3   :  { %322 = vmatpush3.bf16.xpose.msra.mxu0 %v68_v2 }
   0x4   :  { %323 = vmatprep.subr.bf16.mxu0 %v384_v1 }
   0x5   :  { %12 = vsyncpa [#allocation4], 0  ;;  %v65_v4 = vsel %vm60_vm0, %v347_v3, 0  ;;  %v348_v5 = vld [vmem:[%s477_s0] sm:$0xff]   ;;  %v349_v35 = vld [vmem:[%s482_s5 + $0x18] sm:$0xff]   ;;  %vm174_vm2 = vcmask 257024  }
   0x6   :  { %v295_v6 = vld [vmem:[%s479_s2] ss:$0 sm:$0xff]  ;;  %v233_v36 = vsel %vm60_vm0, %v349_v35, 0  ;;  %v350_v37 = vld [vmem:[%s482_s5 + $0x10] sm:$0xff]   ;;  %v351_v39 = vld [vmem:[%s482_s5 + $0x8] sm:$0xff]   ;;  %vm276_vm3 = vcmask 523264  }
   0x7   :  { %330 = vmatpush3.bf16.xpose.msra.mxu1 %v233_v36  ;;  %v230_v38 = vsel %vm60_vm0, %v350_v37, 0  ;;  %v227_v40 = vsel %vm60_vm0, %v351_v39, 0  ;;  %v352_v41 = vld [vmem:[%s482_s5] sm:$0xff]  }
   0x8   :  { %331 = vmatprep.subr.bf16.mxu1 %v384_v1  ;;  %v224_v42 = vsel %vm60_vm0, %v352_v41, 0  ;;  %v300_v50 = vld [vmem:[%s480_s3] ss:$0 sm:$0xff] }
   0x9   :  { %v301_v52 = vld [vmem:[%s481_s4] ss:$0 sm:$0xff]  ;;  %s386_s4 = smov [#allocation3]  }
   0xa   :  { %v304_v62 = vld [vmem:[%s483_s6] ss:$0 sm:$0xff]  ;;  %s284_s18 = sshll.u32 %s386_s4, 4  ;;  %s285_s18 = int_to_ptr.vmem [resolvable:$true] %s284_s18 }
   0xb   :  { %324 = vmatpush3.bf16.xpose.msra.mxu0 %v65_v4  ;;  %s362_s19 = scalar_lea.vmem %s285_s18, 256  ;;  %p367_p1 = scmp.lt.s32.totalorder %s285_s18, %s285_s18 }
   0xc   :  { %p363_p0 = scmp.ne.s32.totalorder %s285_s18, %s362_s19  ;;  %p368_p2 = scmp.lt.s32.totalorder %s362_s19, %s362_s19 }
   0xe   :  { %p369_p3 = por %p368_p2, %p367_p1 }
   0xf   :  { %332 = vmatpush3.bf16.xpose.msra.mxu1 %v230_v38 }
  0x10   :  { %333 = vmatprep.subr.bf16.mxu1 %v384_v1  ;;  %p370_p4 = pnand %p369_p3, %p363_p0 }
  0x12   :  { %326 = vmatmul.mubr.msk.bf16.vlgmr.msra.gmra.mxu0 %vm60_vm0, %v348_v5 }
  0x17   :  { %334 = vmatpush3.bf16.xpose.msra.mxu1 %v227_v40 }
  0x18   :  { %335 = vmatprep.subr.bf16.mxu1 %v384_v1 }
  0x1f   :  { %336 = vmatpush3.bf16.xpose.msra.mxu1 %v224_v42 }
  0xd2   :  { %v104_v7 = vpop.f32.mrf.mxu0 }
  0xd3   :  { %v105_v8 = vadd.f32 %v295_v6, %v104_v7 }
  0xd4   :  { %v327_v9 = vpop.f32.mrf.mxu0 }
  0xd5   :  { %v113_v10 = vmul.f32 0.70710677, %v105_v8  ;;  %v111_v16 = vmul.f32 0.5, %v105_v8 }
  0xd6   :  { %v107_v11 = vpop.f32.mrf.mxu0 }
  0xd7   :  { %354 = verf.f32 %v113_v10  ;;  %v108_v12 = vadd.f32 %v295_v6, %v107_v11 }
  0xd8   :  { %v328_v13 = vpop.f32.mrf.mxu0 }
  0xd9   :  { %v114_v14 = vmul.f32 0.70710677, %v108_v12  ;;  %v112_v20 = vmul.f32 0.5, %v108_v12 }
  0xdb   :  { %356 = verf.f32 %v114_v14 }
  0xe4   :  { %v355_v15 = vpop.eup %354 }
  0xe5   :  { %v117_v17 = vadd.f32 1.0, %v355_v15 }
  0xe7   :  { %v119_v18 = vmul.f32 %v117_v17, %v111_v16 }
  0xe8   :  { %v357_v19 = vpop.eup %356 }
  0xe9   :  { %v121_v21 = vsel %vm60_vm0, %v119_v18, 0.0  ;;  %v118_v22 = vadd.f32 1.0, %v357_v19 }
  0xea   :  { %122 = vadd.xlane.f32.xlu0 %v121_v21 }
  0xeb   :  { %v120_v23 = vmul.f32 %v118_v22, %v112_v20 }
  0xed   :  { %v124_v24 = vsel %vm60_vm0, %v120_v23, 0.0 }
  0xee   :  { %125 = vadd.xlane.f32.xlu0 %v124_v24 }
 0x173   :  { %v123_v25 = vpop.xlane.xlu0 %122 }
 0x174   :  { %v128_v26 = vmul.f32 0.03125, %v123_v25 }
 0x176   :  { %v130_v27 = vsub.f32 %v119_v18, %v128_v26 }
 0x177   :  { %v126_v28 = vpop.xlane.xlu0 %125 }
 0x178   :  { %v129_v29 = vmul.f32 0.03125, %v126_v28  ;;  %v132_v30 = vmul.f32 %v130_v27, %v130_v27 }
 0x17a   :  { %v131_v31 = vsub.f32 %v120_v23, %v129_v29  ;;  %v134_v32 = vsel %vm60_vm0, %v132_v30, 0.0 }
 0x17b   :  { %135 = vadd.xlane.f32.xlu1 %v134_v32 }
 0x17c   :  { %v133_v33 = vmul.f32 %v131_v31, %v131_v31 }
 0x17e   :  { %v137_v34 = vsel %vm60_vm0, %v133_v33, 0.0 }
 0x17f   :  { %138 = vadd.xlane.f32.xlu1 %v137_v34 }
 0x204   :  { %v136_v43 = vpop.xlane.xlu1 %135 }
 0x205   :  { %v140_v44 = vmul.f32 0.03125, %v136_v43 }
 0x207   :  { %v142_v45 = vadd.f32 1e-12, %v140_v44 }
 0x208   :  { %v139_v46 = vpop.xlane.xlu1 %138 }
 0x209   :  { %358 = vrsqrt.f32 %v142_v45  ;;  %v141_v47 = vmul.f32 0.03125, %v139_v46 }
 0x20b   :  { %v143_v48 = vadd.f32 1e-12, %v141_v47 }
 0x20d   :  { %360 = vrsqrt.f32 %v143_v48 }
 0x216   :  { %v359_v49 = vpop.eup %358 }
 0x217   :  { %v146_v51 = vmul.f32 %v359_v49, %v130_v27 }
 0x219   :  { %v155_v53 = vmul.f32 %v300_v50, %v146_v51 }
 0x21a   :  { %v361_v54 = vpop.eup %360 }
 0x21b   :  { %v164_v55 = vadd.f32 %v301_v52, %v155_v53  ;;  %v147_v56 = vmul.f32 %v361_v54, %v131_v31 }
 0x21d   :  { %v311_v57 = vpack.c.bf16 %v164_v55, %v164_v55  ;;  %v156_v58 = vmul.f32 %v300_v50, %v147_v56 }
 0x21f   :  { %175 = vst.msk [vmem:[#allocation2] sm:$0xf] %vm174_vm2, %v311_v57  ;;  %v165_v59 = vadd.f32 %v301_v52, %v156_v58 }
 0x221   :  { %v312_v60 = vpack.c.bf16 %v165_v59, %v165_v59 }
 0x223   :  { %176 = vst.msk [vmem:[#allocation2 + $0x4] sm:$0xf] %vm174_vm2, %v312_v60 }
 0x22a   :  { %v353_v61 = vld [vmem:[#allocation2] sm:$0xff]  }
 0x22b   :  { %338 = vmatmul.mubr.msk.bf16.vlgmr.msra.gmra.mxu1 %vm60_vm0, %v353_v61 }
 0x2eb   :  { %v269_v63 = vpop.f32.mrf.mxu1 }
 0x2ec   :  { %v270_v0 = vadd.f32 %v304_v62, %v269_v63 }
 0x2ed   :  { %v339_v1 = vpop.f32.mrf.mxu1 }
 0x2ee   :  { %277 = vst.msk [vmem:[#allocation3] sm:$0xff] %vm276_vm3, %v270_v0 }
 0x2ef   :  { %v272_v2 = vpop.f32.mrf.mxu1 }
 0x2f0   :  { %v273_v3 = vadd.f32 %v304_v62, %v272_v2 }
 0x2f1   :  { %v340_v4 = vpop.f32.mrf.mxu1 }
 0x2f2   :  { %278 = vst.msk [vmem:[#allocation3 + $0x8] sm:$0xff] %vm276_vm3, %v273_v3 }
 0x2f3   :  { %373 = shalt.err (!%p370_p4)
}
 0x2f4   :  { %s387_s6 = smov 128   ;;  %s388_s20 = smov 8  }
 0x2f5   :  { %290 = dma.vmem_to_hbm [thread:$0]  %s285_s18, 256, %s484_s7, [#allocation4], %s387_s6, %s387_s6, %s388_s20  }
 0x2f6   :  { %382 = dma.done.wait [#allocation4], 256  }
 0x2f7   :  { %383 = vsyncadd [#allocation4], 4294967040 }
 0x2f8   :  { %294 = vsyncpa [#allocation4], 1 }

// kernel: tpu_custom_call.1
= control target key start
LH: loop header
LB: loop body
LE: loop exit
PB: predicated region body
PF: predicated region fallthrough
CT: control target
= control target key end

     0   :  { %v384_v1 = vmov 0.0   ;;  %vm60_vm0 = vcmask 261120   ;;  %vm385_vm1 = vmmov 0   ;;  %s477_s0 = inlined_call_operand.vmem [shape: bf16[16,32], index: 0, kind: input, shape index: {}]   ;;  %s478_s1 = inlined_call_operand.vmem [shape: bf16[32,32], index: 1, kind: input, shape index: {}]   ;;  %s479_s2 = inlined_call_operand.vmem [shape: f32[1,32], index: 2, kind: input, shape index: {}]   ;;  %s480_s3 = inlined_call_operand.vmem [shape: f32[1,32], index: 3, kind: input, shape index: {}]   ;;  %s481_s4 = inlined_call_operand.vmem [shape: f32[1,32], index: 4, kind: input, shape index: {}]   ;;  %s482_s5 = inlined_call_operand.vmem [shape: bf16[64,32], index: 5, kind: input, shape index: {}]   ;;  %s483_s6 = inlined_call_operand.vmem [shape: f32[1,64], index: 6, kind: input, shape index: {}]   ;;  %s484_s7 = inlined_call_operand.hbm [shape: f32[16,64], index: 7, kind: output, shape index: {}]  }
   0x1   :  { %v346_v0 = vld [vmem:[%s478_s1 + $0x8] sm:$0xff]   ;;  %321 = vmatprep.subr.bf16.mxu0 %v384_v1  ;;  %329 = vmatprep.subr.bf16.mxu1 %v384_v1  ;;  %v347_v3 = vld [vmem:[%s478_s1] sm:$0xff]  }
   0x2   :  { %v68_v2 = vsel %vm60_vm0, %v346_v0, 0  ;;  %325 = vmatprep.mubr.msk.bf16.mxu0 %vm385_vm1, %v384_v1  ;;  %337 = vmatprep.mubr.msk.bf16.mxu1 %vm385_vm1, %v384_v1 }
   0x3   :  { %322 = vmatpush3.bf16.xpose.msra.mxu0 %v68_v2 }
   0x4   :  { %323 = vmatprep.subr.bf16.mxu0 %v384_v1 }
   0x5   :  { %12 = vsyncpa [#allocation4], 0  ;;  %v65_v4 = vsel %vm60_vm0, %v347_v3, 0  ;;  %v348_v5 = vld [vmem:[%s477_s0] sm:$0xff]   ;;  %v349_v35 = vld [vmem:[%s482_s5 + $0x18] sm:$0xff]   ;;  %vm174_vm2 = vcmask 257024  }
   0x6   :  { %v295_v6 = vld [vmem:[%s479_s2] ss:$0 sm:$0xff]  ;;  %v233_v36 = vsel %vm60_vm0, %v349_v35, 0  ;;  %v350_v37 = vld [vmem:[%s482_s5 + $0x10] sm:$0xff]   ;;  %v351_v39 = vld [vmem:[%s482_s5 + $0x8] sm:$0xff]   ;;  %vm276_vm3 = vcmask 523264  }
   0x7   :  { %330 = vmatpush3.bf16.xpose.msra.mxu1 %v233_v36  ;;  %v230_v38 = vsel %vm60_vm0, %v350_v37, 0  ;;  %v227_v40 = vsel %vm60_vm0, %v351_v39, 0  ;;  %v352_v41 = vld [vmem:[%s482_s5] sm:$0xff]  }
   0x8   :  { %331 = vmatprep.subr.bf16.mxu1 %v384_v1  ;;  %v224_v42 = vsel %vm60_vm0, %v352_v41, 0  ;;  %v300_v50 = vld [vmem:[%s480_s3] ss:$0 sm:$0xff] }
   0x9   :  { %v301_v52 = vld [vmem:[%s481_s4] ss:$0 sm:$0xff]  ;;  %s386_s4 = smov [#allocation3]  }
   0xa   :  { %v304_v62 = vld [vmem:[%s483_s6] ss:$0 sm:$0xff]  ;;  %s284_s18 = sshll.u32 %s386_s4, 4  ;;  %s285_s18 = int_to_ptr.vmem [resolvable:$true] %s284_s18 }
   0xb   :  { %324 = vmatpush3.bf16.xpose.msra.mxu0 %v65_v4  ;;  %s362_s19 = scalar_lea.vmem %s285_s18, 256  ;;  %p367_p1 = scmp.lt.s32.totalorder %s285_s18, %s285_s18 }
   0xc   :  { %p363_p0 = scmp.ne.s32.totalorder %s285_s18, %s362_s19  ;;  %p368_p2 = scmp.lt.s32.totalorder %s362_s19, %s362_s19 }
   0xe   :  { %p369_p3 = por %p368_p2, %p367_p1 }
   0xf   :  { %332 = vmatpush3.bf16.xpose.msra.mxu1 %v230_v38 }
  0x10   :  { %333 = vmatprep.subr.bf16.mxu1 %v384_v1  ;;  %p370_p4 = pnand %p369_p3, %p363_p0 }
  0x12   :  { %326 = vmatmul.mubr.msk.bf16.vlgmr.msra.gmra.mxu0 %vm60_vm0, %v348_v5 }
  0x17   :  { %334 = vmatpush3.bf16.xpose.msra.mxu1 %v227_v40 }
  0x18   :  { %335 = vmatprep.subr.bf16.mxu1 %v384_v1 }
  0x1f   :  { %336 = vmatpush3.bf16.xpose.msra.mxu1 %v224_v42 }
  0xd2   :  { %v104_v7 = vpop.f32.mrf.mxu0 }
  0xd3   :  { %v105_v8 = vadd.f32 %v295_v6, %v104_v7 }
  0xd4   :  { %v327_v9 = vpop.f32.mrf.mxu0 }
  0xd5   :  { %v113_v10 = vmul.f32 0.70710677, %v105_v8  ;;  %v111_v16 = vmul.f32 0.5, %v105_v8 }
  0xd6   :  { %v107_v11 = vpop.f32.mrf.mxu0 }
  0xd7   :  { %354 = verf.f32 %v113_v10  ;;  %v108_v12 = vadd.f32 %v295_v6, %v107_v11 }
  0xd8   :  { %v328_v13 = vpop.f32.mrf.mxu0 }
  0xd9   :  { %v114_v14 = vmul.f32 0.70710677, %v108_v12  ;;  %v112_v20 = vmul.f32 0.5, %v108_v12 }
  0xdb   :  { %356 = verf.f32 %v114_v14 }
  0xe4   :  { %v355_v15 = vpop.eup %354 }
  0xe5   :  { %v117_v17 = vadd.f32 1.0, %v355_v15 }
  0xe7   :  { %v119_v18 = vmul.f32 %v117_v17, %v111_v16 }
  0xe8   :  { %v357_v19 = vpop.eup %356 }
  0xe9   :  { %v121_v21 = vsel %vm60_vm0, %v119_v18, 0.0  ;;  %v118_v22 = vadd.f32 1.0, %v357_v19 }
  0xea   :  { %122 = vadd.xlane.f32.xlu0 %v121_v21 }
  0xeb   :  { %v120_v23 = vmul.f32 %v118_v22, %v112_v20 }
  0xed   :  { %v124_v24 = vsel %vm60_vm0, %v120_v23, 0.0 }
  0xee   :  { %125 = vadd.xlane.f32.xlu0 %v124_v24 }
 0x173   :  { %v123_v25 = vpop.xlane.xlu0 %122 }
 0x174   :  { %v128_v26 = vmul.f32 0.03125, %v123_v25 }
 0x176   :  { %v130_v27 = vsub.f32 %v119_v18, %v128_v26 }
 0x177   :  { %v126_v28 = vpop.xlane.xlu0 %125 }
 0x178   :  { %v129_v29 = vmul.f32 0.03125, %v126_v28  ;;  %v132_v30 = vmul.f32 %v130_v27, %v130_v27 }
 0x17a   :  { %v131_v31 = vsub.f32 %v120_v23, %v129_v29  ;;  %v134_v32 = vsel %vm60_vm0, %v132_v30, 0.0 }
 0x17b   :  { %135 = vadd.xlane.f32.xlu1 %v134_v32 }
 0x17c   :  { %v133_v33 = vmul.f32 %v131_v31, %v131_v31 }
 0x17e   :  { %v137_v34 = vsel %vm60_vm0, %v133_v33, 0.0 }
 0x17f   :  { %138 = vadd.xlane.f32.xlu1 %v137_v34 }
 0x204   :  { %v136_v43 = vpop.xlane.xlu1 %135 }
 0x205   :  { %v140_v44 = vmul.f32 0.03125, %v136_v43 }
 0x207   :  { %v142_v45 = vadd.f32 1e-12, %v140_v44 }
 0x208   :  { %v139_v46 = vpop.xlane.xlu1 %138 }
 0x209   :  { %358 = vrsqrt.f32 %v142_v45  ;;  %v141_v47 = vmul.f32 0.03125, %v139_v46 }
 0x20b   :  { %v143_v48 = vadd.f32 1e-12, %v141_v47 }
 0x20d   :  { %360 = vrsqrt.f32 %v143_v48 }
 0x216   :  { %v359_v49 = vpop.eup %358 }
 0x217   :  { %v146_v51 = vmul.f32 %v359_v49, %v130_v27 }
 0x219   :  { %v155_v53 = vmul.f32 %v300_v50, %v146_v51 }
 0x21a   :  { %v361_v54 = vpop.eup %360 }
 0x21b   :  { %v164_v55 = vadd.f32 %v301_v52, %v155_v53  ;;  %v147_v56 = vmul.f32 %v361_v54, %v131_v31 }
 0x21d   :  { %v311_v57 = vpack.c.bf16 %v164_v55, %v164_v55  ;;  %v156_v58 = vmul.f32 %v300_v50, %v147_v56 }
 0x21f   :  { %175 = vst.msk [vmem:[#allocation2] sm:$0xf] %vm174_vm2, %v311_v57  ;;  %v165_v59 = vadd.f32 %v301_v52, %v156_v58 }
 0x221   :  { %v312_v60 = vpack.c.bf16 %v165_v59, %v165_v59 }
 0x223   :  { %176 = vst.msk [vmem:[#allocation2 + $0x4] sm:$0xf] %vm174_vm2, %v312_v60 }
 0x22a   :  { %v353_v61 = vld [vmem:[#allocation2] sm:$0xff]  }
 0x22b   :  { %338 = vmatmul.mubr.msk.bf16.vlgmr.msra.gmra.mxu1 %vm60_vm0, %v353_v61 }
 0x2eb   :  { %v269_v63 = vpop.f32.mrf.mxu1 }
 0x2ec   :  { %v270_v0 = vadd.f32 %v304_v62, %v269_v63 }
 0x2ed   :  { %v339_v1 = vpop.f32.mrf.mxu1 }
 0x2ee   :  { %277 = vst.msk [vmem:[#allocation3] sm:$0xff] %vm276_vm3, %v270_v0 }
 0x2ef   :  { %v272_v2 = vpop.f32.mrf.mxu1 }
 0x2f0   :  { %v273_v3 = vadd.f32 %v304_v62, %v272_v2 }
 0x2f1   :  { %v340_v4 = vpop.f32.mrf.mxu1 }
 0x2f2   :  { %278 = vst.msk [vmem:[#allocation3 + $0x8] sm:$0xff] %vm276_vm3, %v273_v3 }
 0x2f3   :  { %373 = shalt.err (!%p370_p4)
}
 0x2f4   :  { %s387_s6 = smov 128   ;;  %s388_s20 = smov 8  }
 0x2f5   :  { %290 = dma.vmem_to_hbm [thread:$0]  %s285_s18, 256, %s484_s7, [#allocation4], %s387_s6, %s387_s6, %s388_s20  }
 0x2f6   :  { %382 = dma.done.wait [#allocation4], 256  }
 0x2f7   :  { %383 = vsyncadd [#allocation4], 4294967040 }
 0x2f8   :  { %294 = vsyncpa [#allocation4], 1 }

</bundles_post_ra>
